<compile_context>
chip_gen: v6e
topology: v6e:2x2x1
jax: 0.10.0
libtpu: 0.0.40
codegen_flags: <defaults>
</compile_context>

<pallas_src>
import jax
import jax.numpy as jnp
import numpy as np
from jax.experimental import pallas as pl
from jax.experimental.pallas import tpu as pltpu


def prediction_kernel(s_ref, x_ref, val_ref, pol_ref):
    # s_ref  : (5 + 2C,) SMEM f32
    #          [value_conv_b, value_fc_w, value_fc_b, policy_conv_b, pass_logit,
    #           wv_0..wv_{C-1}, wp_0..wp_{C-1}]
    # x_ref  : (bb, C*HW) VMEM  -- NCHW latent block, channels contiguous on lanes
    # val_ref: (bb, 1)    VMEM  -- value head output
    # pol_ref: (bb, HW+1) VMEM  -- board logits + pass logit column
    bb = x_ref.shape[0]
    HW = pol_ref.shape[1] - 1
    C = x_ref.shape[1] // HW

    value_bias = s_ref[0]
    fc_w = s_ref[1]
    fc_b = s_ref[2]
    policy_bias = s_ref[3]
    pass_logit = s_ref[4]

    # Channel 0 (static unroll over tiny C; pure VPU FMA + XLU row reduce).
    x0 = x_ref[:, 0:HW].astype(jnp.float32)                        # (bb, HW)
    pacc = x0 * s_ref[5 + C + 0]                                   # policy accumulator
    vrow = jnp.sum(x0, axis=1, keepdims=True) * s_ref[5 + 0]       # (bb, 1) value pre-sum
    for c in range(1, C):
        xc = x_ref[:, c * HW:(c + 1) * HW].astype(jnp.float32)
        pacc = pacc + xc * s_ref[5 + C + c]
        vrow = vrow + jnp.sum(xc, axis=1, keepdims=True) * s_ref[5 + c]

    # Policy head: lane-dense board logits + one masked tail column (pass logit).
    pol_ref[:, 0:HW] = (pacc + policy_bias).astype(pol_ref.dtype)
    pol_ref[:, HW:HW + 1] = (jnp.zeros((bb, 1), jnp.float32) + pass_logit).astype(pol_ref.dtype)

    # Value head: fold conv bias and 1/HW into the post-reduce scalar affine.
    value = (vrow * (1.0 / HW) + value_bias) * fc_w + fc_b
    val_ref[...] = value.astype(val_ref.dtype)


def _choose_block_b(B, block_b):
    """Batch tile: full B when small; otherwise >=2 grid steps, rows % 16 == 0."""
    if B <= 16:
        return B
    half = pl.cdiv(B, 2)
    half16 = ((half + 15) // 16) * 16
    return min(block_b, half16)


def prediction_network(latent_nchw, params, *, block_b=1024):
    """latent_nchw: (B, C, H, W). Returns (value (B,1), policy_logits (B, H*W+1))."""
    B, C, H, W = latent_nchw.shape
    HW = H * W

    # Free, contiguous reshape — no transpose, no extra HBM traffic.
    x = latent_nchw.reshape(B, C * HW)
    if x.dtype not in (jnp.float32, jnp.bfloat16):
        x = x.astype(jnp.float32)

    bb = _choose_block_b(B, block_b)
    grid_b = pl.cdiv(B, bb)
    B_pad = grid_b * bb
    if B_pad != B:
        # Only pads the (B_pad - B) remainder rows; skipped whenever bb | B.
        x = jnp.pad(x, ((0, B_pad - B), (0, 0)))

    # All weights / biases as SMEM scalars (scalar prefetch):
    # [value_b, fc_w, fc_b, policy_b, pass_logit] + wv (C) + wp (C)
    scalars = jnp.concatenate([
        jnp.stack([
            params["value_conv_b"].reshape(()),
            params["value_fc_w"].reshape(()),
            params["value_fc_b"].reshape(()),
            params["policy_conv_b"].reshape(()),
            params["pass_logit"].reshape(()),
        ]),
        params["value_conv_w"].reshape(-1),
        params["policy_conv_w"].reshape(-1),
    ]).astype(jnp.float32)                                          # (5 + 2C,)

    grid_spec = pltpu.PrefetchScalarGridSpec(
        num_scalar_prefetch=1,
        grid=(grid_b,),
        in_specs=[
            pl.BlockSpec((bb, C * HW), lambda i, s: (i, 0)),        # latent block
        ],
        out_specs=(
            pl.BlockSpec((bb, 1), lambda i, s: (i, 0)),             # value
            pl.BlockSpec((bb, HW + 1), lambda i, s: (i, 0)),        # policy logits
        ),
    )

    value_pad, policy_pad = pl.pallas_call(
        prediction_kernel,
        out_shape=(
            jax.ShapeDtypeStruct((B_pad, 1), jnp.float32),
            jax.ShapeDtypeStruct((B_pad, HW + 1), jnp.float32),
        ),
        grid_spec=grid_spec,
        compiler_params=pltpu.CompilerParams(
            dimension_semantics=("parallel",),
        ),
    )(scalars, x)

    if B_pad != B:
        return value_pad[:B], policy_pad[:B]
    return value_pad, policy_pad


def reference_forward(latent_nchw, params):
    """Pure-JAX reference mirroring the PyTorch module exactly."""
    B, C, H, W = latent_nchw.shape
    x = latent_nchw.astype(jnp.float32)
    value_map = jnp.einsum("bchw,c->bhw", x, params["value_conv_w"]) + params["value_conv_b"]
    value = value_map.reshape(B, -1).mean(axis=1, keepdims=True)          # (B, 1)
    value = value * params["value_fc_w"] + params["value_fc_b"]
    policy_map = jnp.einsum("bchw,c->bhw", x, params["policy_conv_w"]) + params["policy_conv_b"]
    board_policy = policy_map.reshape(B, -1)
    pass_col = jnp.broadcast_to(params["pass_logit"], (B, 1))
    policy_logits = jnp.concatenate([board_policy, pass_col], axis=1)
    return value, policy_logits


def init_params(key, latent_dim):
    """Deterministic synthetic init matching the PyTorch __init__ shapes."""
    k1, k2, k3, k4, k5, k6 = jax.random.split(key, 6)
    return {
        "value_conv_w": 0.1 * jax.random.normal(k1, (latent_dim,), jnp.float32),
        "value_conv_b": 0.1 * jax.random.normal(k2, (), jnp.float32),
        "value_fc_w": 0.1 * jax.random.normal(k3, (), jnp.float32),
        "value_fc_b": 0.1 * jax.random.normal(k4, (), jnp.float32),
        "policy_conv_w": 0.1 * jax.random.normal(k5, (latent_dim,), jnp.float32),
        "policy_conv_b": 0.1 * jax.random.normal(k6, (), jnp.float32),
        "pass_logit": jnp.zeros((), jnp.float32),
    }


if __name__ == "__main__":
    B, C, H, W = 2, 4, 16, 16
    key = jax.random.PRNGKey(0)
    pkey, xkey = jax.random.split(key)
    params = init_params(pkey, C)
    x = jax.random.normal(xkey, (B, C, H, W), jnp.float32)

    value, policy_logits = prediction_network(x, params)
    value = jax.block_until_ready(value)
    policy_logits = jax.block_until_ready(policy_logits)

    ref_value, ref_policy = reference_forward(x, params)
    assert value.shape == (B, 1)
    assert policy_logits.shape == (B, H * W + 1)
    np.testing.assert_allclose(np.asarray(value), np.asarray(ref_value), rtol=1e-5, atol=1e-5)
    np.testing.assert_allclose(np.asarray(policy_logits), np.asarray(ref_policy), rtol=1e-5, atol=1e-5)

    print("KERNEL_OK")
</pallas_src>

<mosaic_0001>
module attributes {stable_mosaic.version = 11 : i64} {
  func.func @prediction_kernel(%arg0: i32, %arg1: memref<13xf32, #tpu.memory_space<smem>>, %arg2: memref<2x1024xf32, #tpu.memory_space<vmem>>, %arg3: memref<2x1xf32, #tpu.memory_space<vmem>>, %arg4: memref<2x257xf32, #tpu.memory_space<vmem>>) attributes {dimension_semantics = [#tpu.dimension_semantics<parallel>], iteration_bounds = array<i64: 1>, scalar_prefetch = 1 : i64, scratch_operands = 0 : i64, tpu.core_type = #tpu.core_type<tc>, window_params = [{transform_indices = @transform_0, window_bounds = array<i64: 2, 1024>}, {transform_indices = @transform_1, window_bounds = array<i64: 2, 1>}, {transform_indices = @transform_2, window_bounds = array<i64: 2, 257>}]} {
    %c0 = arith.constant 0 : index
    %0 = memref.load %arg1[%c0] : memref<13xf32, #tpu.memory_space<smem>>
    %c1 = arith.constant 1 : index
    %1 = memref.load %arg1[%c1] : memref<13xf32, #tpu.memory_space<smem>>
    %c2 = arith.constant 2 : index
    %2 = memref.load %arg1[%c2] : memref<13xf32, #tpu.memory_space<smem>>
    %c3 = arith.constant 3 : index
    %3 = memref.load %arg1[%c3] : memref<13xf32, #tpu.memory_space<smem>>
    %c4 = arith.constant 4 : index
    %4 = memref.load %arg1[%c4] : memref<13xf32, #tpu.memory_space<smem>>
    %c0_0 = arith.constant 0 : index
    %c0_1 = arith.constant 0 : index
    %5 = vector.load %arg2[%c0_0, %c0_1] : memref<2x1024xf32, #tpu.memory_space<vmem>>, vector<2x256xf32>
    %c9 = arith.constant 9 : index
    %6 = memref.load %arg1[%c9] : memref<13xf32, #tpu.memory_space<smem>>
    %7 = vector.broadcast %6 : f32 to vector<2x256xf32>
    %8 = arith.mulf %5, %7 : vector<2x256xf32>
    %cst = arith.constant dense<0.000000e+00> : vector<2xf32>
    %9 = vector.multi_reduction <add>, %5, %cst [1] : vector<2x256xf32> to vector<2xf32>
    %10 = vector.shape_cast %9 : vector<2xf32> to vector<2x1xf32>
    %c5 = arith.constant 5 : index
    %11 = memref.load %arg1[%c5] : memref<13xf32, #tpu.memory_space<smem>>
    %12 = vector.broadcast %11 : f32 to vector<2x1xf32>
    %13 = arith.mulf %10, %12 : vector<2x1xf32>
    %c0_2 = arith.constant 0 : index
    %c256 = arith.constant 256 : index
    %14 = vector.load %arg2[%c0_2, %c256] : memref<2x1024xf32, #tpu.memory_space<vmem>>, vector<2x256xf32>
    %c10 = arith.constant 10 : index
    %15 = memref.load %arg1[%c10] : memref<13xf32, #tpu.memory_space<smem>>
    %16 = vector.broadcast %15 : f32 to vector<2x256xf32>
    %17 = arith.mulf %14, %16 : vector<2x256xf32>
    %18 = arith.addf %8, %17 : vector<2x256xf32>
    %cst_3 = arith.constant dense<0.000000e+00> : vector<2xf32>
    %19 = vector.multi_reduction <add>, %14, %cst_3 [1] : vector<2x256xf32> to vector<2xf32>
    %20 = vector.shape_cast %19 : vector<2xf32> to vector<2x1xf32>
    %c6 = arith.constant 6 : index
    %21 = memref.load %arg1[%c6] : memref<13xf32, #tpu.memory_space<smem>>
    %22 = vector.broadcast %21 : f32 to vector<2x1xf32>
    %23 = arith.mulf %20, %22 : vector<2x1xf32>
    %24 = arith.addf %13, %23 : vector<2x1xf32>
    %c0_4 = arith.constant 0 : index
    %c512 = arith.constant 512 : index
    %25 = vector.load %arg2[%c0_4, %c512] : memref<2x1024xf32, #tpu.memory_space<vmem>>, vector<2x256xf32>
    %c11 = arith.constant 11 : index
    %26 = memref.load %arg1[%c11] : memref<13xf32, #tpu.memory_space<smem>>
    %27 = vector.broadcast %26 : f32 to vector<2x256xf32>
    %28 = arith.mulf %25, %27 : vector<2x256xf32>
    %29 = arith.addf %18, %28 : vector<2x256xf32>
    %cst_5 = arith.constant dense<0.000000e+00> : vector<2xf32>
    %30 = vector.multi_reduction <add>, %25, %cst_5 [1] : vector<2x256xf32> to vector<2xf32>
    %31 = vector.shape_cast %30 : vector<2xf32> to vector<2x1xf32>
    %c7 = arith.constant 7 : index
    %32 = memref.load %arg1[%c7] : memref<13xf32, #tpu.memory_space<smem>>
    %33 = vector.broadcast %32 : f32 to vector<2x1xf32>
    %34 = arith.mulf %31, %33 : vector<2x1xf32>
    %35 = arith.addf %24, %34 : vector<2x1xf32>
    %c0_6 = arith.constant 0 : index
    %c768 = arith.constant 768 : index
    %36 = vector.load %arg2[%c0_6, %c768] : memref<2x1024xf32, #tpu.memory_space<vmem>>, vector<2x256xf32>
    %c12 = arith.constant 12 : index
    %37 = memref.load %arg1[%c12] : memref<13xf32, #tpu.memory_space<smem>>
    %38 = vector.broadcast %37 : f32 to vector<2x256xf32>
    %39 = arith.mulf %36, %38 : vector<2x256xf32>
    %40 = arith.addf %29, %39 : vector<2x256xf32>
    %cst_7 = arith.constant dense<0.000000e+00> : vector<2xf32>
    %41 = vector.multi_reduction <add>, %36, %cst_7 [1] : vector<2x256xf32> to vector<2xf32>
    %42 = vector.shape_cast %41 : vector<2xf32> to vector<2x1xf32>
    %c8 = arith.constant 8 : index
    %43 = memref.load %arg1[%c8] : memref<13xf32, #tpu.memory_space<smem>>
    %44 = vector.broadcast %43 : f32 to vector<2x1xf32>
    %45 = arith.mulf %42, %44 : vector<2x1xf32>
    %46 = arith.addf %35, %45 : vector<2x1xf32>
    %47 = vector.broadcast %3 : f32 to vector<2x256xf32>
    %48 = arith.addf %40, %47 : vector<2x256xf32>
    %c0_8 = arith.constant 0 : index
    %c0_9 = arith.constant 0 : index
    %49 = vector.load %arg4[%c0_8, %c0_9] : memref<2x257xf32, #tpu.memory_space<vmem>>, vector<2x256xf32>
    tpu.vector_store %arg4[%c0_8, %c0_9], %48 {strides = array<i32>} : memref<2x257xf32, #tpu.memory_space<vmem>>, vector<2x256xf32>,
    %cst_10 = arith.constant 0.000000e+00 : f32
    %50 = vector.broadcast %cst_10 : f32 to vector<2x1xf32>
    %51 = vector.broadcast %4 : f32 to vector<2x1xf32>
    %52 = arith.addf %50, %51 : vector<2x1xf32>
    %c0_11 = arith.constant 0 : index
    %c256_12 = arith.constant 256 : index
    %53 = vector.load %arg4[%c0_11, %c256_12] : memref<2x257xf32, #tpu.memory_space<vmem>>, vector<2x1xf32>
    tpu.vector_store %arg4[%c0_11, %c256_12], %52 {strides = array<i32>} : memref<2x257xf32, #tpu.memory_space<vmem>>, vector<2x1xf32>,
    %cst_13 = arith.constant 3.906250e-03 : f32
    %54 = vector.broadcast %cst_13 : f32 to vector<2x1xf32>
    %55 = arith.mulf %46, %54 : vector<2x1xf32>
    %56 = vector.broadcast %0 : f32 to vector<2x1xf32>
    %57 = arith.addf %55, %56 : vector<2x1xf32>
    %58 = vector.broadcast %1 : f32 to vector<2x1xf32>
    %59 = arith.mulf %57, %58 : vector<2x1xf32>
    %60 = vector.broadcast %2 : f32 to vector<2x1xf32>
    %61 = arith.addf %59, %60 : vector<2x1xf32>
    %c0_14 = arith.constant 0 : index
    %c0_15 = arith.constant 0 : index
    %62 = vector.load %arg3[%c0_14, %c0_15] : memref<2x1xf32, #tpu.memory_space<vmem>>, vector<2x1xf32>
    tpu.vector_store %arg3[%c0_14, %c0_15], %61 {strides = array<i32>} : memref<2x1xf32, #tpu.memory_space<vmem>>, vector<2x1xf32>,
    return
  }
  func.func @transform_0(%arg0: i32, %arg1: memref<13xf32, #tpu.memory_space<smem>>) -> (i32, i32) {
    %c0_i32 = arith.constant 0 : i32
    %c0_i32_0 = arith.constant 0 : i32
    return %arg0, %c0_i32 : i32, i32
  }
  func.func @transform_1(%arg0: i32, %arg1: memref<13xf32, #tpu.memory_space<smem>>) -> (i32, i32) {
    %c0_i32 = arith.constant 0 : i32
    %c0_i32_0 = arith.constant 0 : i32
    return %arg0, %c0_i32 : i32, i32
  }
  func.func @transform_2(%arg0: i32, %arg1: memref<13xf32, #tpu.memory_space<smem>>) -> (i32, i32) {
    %c0_i32 = arith.constant 0 : i32
    %c0_i32_0 = arith.constant 0 : i32
    return %arg0, %c0_i32 : i32, i32
  }
}

</mosaic_0001>

<bundles_post_ra>
// kernel: tpu_custom_call.1
= control target key start
LH: loop header
LB: loop body
LE: loop exit
PB: predicated region body
PF: predicated region fallthrough
CT: control target
= control target key end

     0   :  { %s236_s12 = smov [#allocation3]   ;;  %s282_s0 = inlined_call_operand.hbm [shape: f32[13], index: 0, kind: input, shape index: {}]   ;;  %s283_s1 = inlined_call_operand.hbm [shape: f32[2,1024], index: 1, kind: input, shape index: {}]   ;;  %s284_s2 = inlined_call_operand.vmem [shape: f32[2,1], index: 2, kind: output, shape index: {0}]   ;;  %s285_s3 = inlined_call_operand.hbm [shape: f32[2,257], index: 3, kind: output, shape index: {1}]  }
   0x1   :  { %10 = dma.hbm_to_smem %s282_s0, 16, %s236_s12, [#allocation2] }
   0x2   :  { %230 = dma.done.wait [#allocation2], 16 }
   0x3   :  { %231 = vsyncadd [#allocation2], 4294967280 }
   0x4   :  { %12 = sfence }
   0x5   :  { %13 = vsyncpa [#allocation5], 0 }
   0x6   :  { %14 = vsyncpa [#allocation6], 0  ;;  %s237_s15 = smov [#allocation4]  }
   0x7   :  { %s21_s16 = sshll.u32 %s237_s15, 4  ;;  %s22_s16 = int_to_ptr.vmem [resolvable:$true] %s21_s16 }
   0x8   :  { %s198_s17 = scalar_lea.vmem %s22_s16, 256  ;;  %p203_p1 = scmp.lt.s32.totalorder %s22_s16, %s22_s16 }
   0x9   :  { %p199_p0 = scmp.ne.s32.totalorder %s22_s16, %s198_s17  ;;  %p204_p2 = scmp.lt.s32.totalorder %s198_s17, %s198_s17 }
   0xb   :  { %p205_p3 = por %p204_p2, %p203_p1 }
   0xd   :  { %p206_p4 = pnand %p205_p3, %p199_p0 }
   0xf   :  { %209 = shalt.err (!%p206_p4)
}
  0x10   :  { %24 = dma.hbm_to_vmem [thread:$0]  %s283_s1, 256, %s22_s16, [#allocation5]  }
  0x11   :  { %232 = dma.done.wait [#allocation5], 256  }
  0x12   :  { %233 = vsyncadd [#allocation5], 4294967040  ;;  %v41_v0 = vlaneseq  ;;  %v238_v1 = vmov 1983009808   ;;  %vm48_vm0 = vcmask 1041408   ;;  %s170_s0 = sld [smem:[#allocation3 + $0x9]] }
  0x13   :  { %v39_v2 = vunpack.c.l.s4 %v238_v1  ;;  %v33_v6 = vld [vmem:[#allocation4] sm:$0xf]  ;;  %v82_v7 = vld [vmem:[#allocation4 + $0x8] sm:$0xf]  ;;  %v57_v8 = vld [vmem:[#allocation4 + $0x4] sm:$0xf] }
  0x14   :  { %v42_v3 = vshrl.u32 %v41_v0, 7  ;;  %v107_v11 = vld [vmem:[#allocation4 + $0xc] sm:$0xf]  ;;  %s172_s1 = sld [smem:[#allocation3 + $0xa]]  ;;  %vm137_vm1 = vcmask 1024   ;;  %s239_s24 = smov [#allocation7]  }
  0x15   :  { %v40_v4 = vunpack.c.0.s8 %v39_v2  ;;  %s174_s20 = sld [smem:[#allocation3 + $0xb]]  ;;  %s155_s25 = sshll.u32 %s239_s24, 4  ;;  %s156_s25 = int_to_ptr.vmem [resolvable:$true] %s155_s25 }
  0x16   :  { %s176_s21 = sld [smem:[#allocation3 + $0xc]]  ;;  %s210_s26 = scalar_lea.vmem %s156_s25, 96 }
  0x17   :  { %v43_v5 = vsub.s32 %v40_v4, %v42_v3  ;;  %s168_s22 = sld [smem:[#allocation3 + $0x3]]  ;;  %p211_p5 = scmp.ne.s32.totalorder %s156_s25, %s210_s26 }
  0x18   :  { %v35_v30 = vstv %s170_s0  ;;  %s169_s23 = sld [smem:[#allocation3 + $0x4]]  ;;  %p215_p6 = scmp.lt.s32.totalorder %s156_s25, %s156_s25 }
  0x19   :  { %v44_v9 = vrot.slane %v33_v6, %v43_v5  ;;  %v94_v10 = vrot.slane %v82_v7, %v43_v5  ;;  %v69_v12 = vrot.slane %v57_v8, %v43_v5  ;;  %v119_v13 = vrot.slane %v107_v11, %v43_v5  ;;  %p216_p7 = scmp.lt.s32.totalorder %s210_s26, %s210_s26 }
  0x1a   :  { %v59_v31 = vstv %s172_s1  ;;  %v36_v32 = vmul.f32 %v35_v30, %v33_v6 }
  0x1b   :  { %v45_v14 = vcombine.high %v44_v9, %v44_v9  ;;  %v49_v15 = vsel %vm48_vm0, %v44_v9, 0.0  ;;  %v95_v16 = vcombine.high %v94_v10, %v94_v10  ;;  %v98_v17 = vsel %vm48_vm0, %v94_v10, 0.0  ;;  %p217_p8 = por %p216_p7, %p215_p6 }
  0x1c   :  { %v70_v18 = vcombine.high %v69_v12, %v69_v12  ;;  %v73_v21 = vsel %vm48_vm0, %v69_v12, 0.0  ;;  %v120_v22 = vcombine.high %v119_v13, %v119_v13  ;;  %v123_v26 = vsel %vm48_vm0, %v119_v13, 0.0 }
  0x1d   :  { %v50_v19 = vsel %vm48_vm0, %v45_v14, 0.0  ;;  %v99_v20 = vsel %vm48_vm0, %v95_v16, 0.0  ;;  %v60_v33 = vmul.f32 %v59_v31, %v57_v8  ;;  %v84_v34 = vstv %s174_s20  ;;  %p218_p9 = pnand %p217_p8, %p211_p5 }
  0x1e   :  { %v51_v23 = vadd.f32 %v50_v19, %v49_v15  ;;  %v100_v24 = vadd.f32 %v99_v20, %v98_v17  ;;  %v74_v25 = vsel %vm48_vm0, %v70_v18, 0.0  ;;  %v124_v27 = vsel %vm48_vm0, %v120_v22, 0.0 }
  0x1f   :  { %v75_v28 = vadd.f32 %v74_v25, %v73_v21  ;;  %v125_v29 = vadd.f32 %v124_v27, %v123_v26  ;;  %v109_v35 = vstv %s176_s21  ;;  %v85_v36 = vmul.f32 %v84_v34, %v82_v7 }
  0x20   :  { %52 = vadd.xlane.f32.xlu0 %v51_v23  ;;  %101 = vadd.xlane.f32.xlu1 %v100_v24  ;;  %v61_v37 = vadd.f32 %v60_v33, %v36_v32  ;;  %v110_v38 = vmul.f32 %v109_v35, %v107_v11  ;;  %v132_v41 = vstv %s168_s22  ;;  %v135_v43 = vstv %s169_s23 }
  0x21   :  { %138 = vst.msk [vmem:[#allocation7 + $0x4] sm:$0x3] %vm137_vm1, %v135_v43 }
  0x22   :  { %v86_v39 = vadd.f32 %v85_v36, %v61_v37 }
  0x24   :  { %76 = vadd.xlane.f32.xlu0 %v75_v28  ;;  %126 = vadd.xlane.f32.xlu1 %v125_v29  ;;  %v111_v40 = vadd.f32 %v110_v38, %v86_v39 }
  0x26   :  { %v133_v42 = vadd.f32 %v132_v41, %v111_v40 }
  0x28   :  { %134 = vst [vmem:[#allocation7] sm:$0xf] %v133_v42 }
  0x29   :  { %221 = shalt.err (!%p218_p9)
}
  0x2a   :  { %158 = dma.vmem_to_hbm [thread:$0]  %s156_s25, 96, %s285_s3, [#allocation6]  }
  0x2b   :  { %s171_s29 = sld [smem:[#allocation3 + $0x5]] }
  0x2c   :  { %s173_s30 = sld [smem:[#allocation3 + $0x6]] }
  0x2d   :  { %s175_s4 = sld [smem:[#allocation3 + $0x7]] }
  0x2e   :  { %s177_s5 = sld [smem:[#allocation3 + $0x8]] }
  0x2f   :  { %s28_s6 = sld [smem:[#allocation3]] }
  0x30   :  { %s166_s7 = sld [smem:[#allocation3 + $0x1]] }
  0x31   :  { %v55_v46 = vstv %s171_s29  ;;  %s167_s3 = sld [smem:[#allocation3 + $0x2]] }
  0x32   :  { %v79_v47 = vstv %s173_s30 }
  0x33   :  { %v104_v48 = vstv %s175_s4 }
  0x34   :  { %v129_v50 = vstv %s177_s5 }
  0x35   :  { %v140_v59 = vstv %s28_s6 }
  0x36   :  { %v142_v61 = vstv %s166_s7 }
  0x37   :  { %v144_v63 = vstv %s167_s3 }
  0xa9   :  { %v53_v44 = vpop.xlane.xlu0 %52  ;;  %v102_v45 = vpop.xlane.xlu1 %101 }
  0xaa   :  { %v56_v52 = vmul.f32 %v55_v46, %v53_v44  ;;  %v105_v54 = vmul.f32 %v104_v48, %v102_v45 }
  0xad   :  { %v77_v49 = vpop.xlane.xlu0 %76  ;;  %v127_v51 = vpop.xlane.xlu1 %126 }
  0xae   :  { %v80_v53 = vmul.f32 %v79_v47, %v77_v49  ;;  %v130_v56 = vmul.f32 %v129_v50, %v127_v51 }
  0xb0   :  { %v81_v55 = vadd.f32 %v80_v53, %v56_v52 }
  0xb2   :  { %v106_v57 = vadd.f32 %v105_v54, %v81_v55 }
  0xb4   :  { %v131_v58 = vadd.f32 %v130_v56, %v106_v57 }
  0xb6   :  { %v139_v60 = vmul.f32 0.00390625, %v131_v58 }
  0xb8   :  { %v141_v62 = vadd.f32 %v140_v59, %v139_v60 }
  0xba   :  { %v143_v0 = vmul.f32 %v142_v61, %v141_v62 }
  0xbc   :  { %v145_v1 = vadd.f32 %v144_v63, %v143_v0 }
  0xbe   :  { %146 = vst.msk [vmem:[%s284_s2] sm:$0x3] %vm137_vm1, %v145_v1 }
  0xbf   :  { %234 = dma.done.wait [#allocation6], 96  }
  0xc0   :  { %235 = vsyncadd [#allocation6], 4294967200 }
  0xc1   :  { %164 = vsyncpa [#allocation5], 1 }
  0xc2   :  { %165 = vsyncpa [#allocation6], 1 }

</bundles_post_ra>
